<compile_context>
chip_gen: v7x
topology: tpu7x:2x2x1
jax: 0.10.0
libtpu: 0.0.40
codegen_flags: <defaults>
</compile_context>

<pallas_src>
import jax
import jax.numpy as jnp
from jax.experimental import pallas as pl
from jax.experimental.pallas import tpu as pltpu

_MIB = 1024 * 1024


def _round_up(v, m):
    return (v + m - 1) // m * m


def _device_vmem_capacity_bytes():
    # Per-TensorCore VMEM: 128 MiB on v5e/v6e, 64 MiB on v7x.  Fall back to the
    # smallest (v7x) value if the query is unavailable so limits stay safe.
    try:
        cap = int(getattr(pltpu.get_tpu_info(), "vmem_capacity_bytes", 0))
        if cap > 0:
            return cap
    except Exception:
        pass
    return 64 * _MIB


# ---------------- fused single-pass kernel (small per-batch slabs) ----------------

def _make_fused_kernel(inv_s):
    def kernel(x_ref, w1_ref, w2_ref, o_ref):
        # x_ref/o_ref: (1, C, S)   w1_ref: (Cr, C)   w2_ref: (C, Cr)
        # Squeeze: f32 accumulation inside the sum only (S may be a ragged,
        # non-128-multiple extent; Mosaic masks the partial trailing vregs).
        pooled = jnp.sum(x_ref[0], axis=-1, keepdims=True,
                         dtype=jnp.float32) * inv_s                          # (C, 1)
        # Excite (once per batch slab; latency hidden under the slab DMA).
        h = jnp.maximum(jnp.dot(w1_ref[...], pooled,
                                preferred_element_type=jnp.float32), 0.0)    # (Cr, 1)
        y = jnp.dot(w2_ref[...], h, preferred_element_type=jnp.float32)      # (C, 1)
        y = jnp.clip((y + 3.0) * (1.0 / 6.0), 0.0, 1.0)                      # hardsigmoid
        # Scale: single store; only the final partial-lane tile (if any) pays
        # a masked vst.
        o_ref[0] = (x_ref[0] * y).astype(o_ref.dtype)
    return kernel


# ---------------- two-pass tiled kernels (large activations) ----------------

def _make_pool_excite_kernel(inv_s, ts, valid_s):
    # valid_s is None when S is an exact multiple of the tile; otherwise it is
    # the true S, used to zero the undefined out-of-bounds lanes of the last
    # spatial tile before accumulating.
    def kernel(x_ref, w1_ref, w2_ref, y_ref, acc_ref):
        si = pl.program_id(1)

        @pl.when(si == 0)
        def _():
            acc_ref[...] = jnp.zeros_like(acc_ref)

        x = x_ref[...]                                                       # (1, C, TS)
        if valid_s is not None:
            col = jax.lax.broadcasted_iota(jnp.int32, x.shape, 2) + si * ts
            x = jnp.where(col < valid_s, x, 0)
        acc_ref[...] += jnp.sum(x, axis=-1, keepdims=True, dtype=jnp.float32)

        # Excite folded into the last S step: saves a kernel launch plus the
        # (B, C) sums HBM round trip.
        @pl.when(si == pl.num_programs(1) - 1)
        def _():
            pooled = acc_ref[0] * inv_s                                      # (C, 1)
            h = jnp.maximum(jnp.dot(w1_ref[...], pooled,
                                    preferred_element_type=jnp.float32), 0.0)
            y = jnp.dot(w2_ref[...], h, preferred_element_type=jnp.float32)  # (C, 1)
            y_ref[0] = jnp.clip((y + 3.0) * (1.0 / 6.0), 0.0, 1.0)
    return kernel


def _scale_kernel(x_ref, y_ref, o_ref):
    # x_ref: (1, C, TS); y_ref: (1, C, 1) f32; o_ref: (1, C, TS)
    # No masking needed: out-of-bounds lanes of the last tile hold undefined
    # data but their stores are dropped by the output DMA.
    o_ref[0] = (x_ref[0] * y_ref[0]).astype(o_ref.dtype)


def se_layer_3d(x, w1, w2, *, max_fused_slab_bytes=None, spatial_tile=8192):
    """x: (B, C, D, H, W); w1: (C//r, C); w2: (C, C//r).  Returns x * SE-scale."""
    assert spatial_tile % 128 == 0
    b, c, d, h, w = x.shape
    cr = w1.shape[0]
    s = d * h * w
    inv_s = 1.0 / float(s)
    itemsize = jnp.dtype(x.dtype).itemsize

    cap = _device_vmem_capacity_bytes()
    c_pad = _round_up(c, 8)
    # VMEM footprint of the (resident but still double-buffered) weight blocks.
    w_vmem = 2 * (_round_up(cr, 8) * _round_up(c, 128)
                  + c_pad * _round_up(cr, 128)) * 4
    # TODO(synk): tile the excite matmuls if C*Cr ever grows beyond this budget.
    assert w_vmem <= 16 * _MIB, "SE weight matrices too large for untiled excite"

    x_flat = x.reshape(b, c, s)
    slab_vmem = c_pad * _round_up(s, 128) * itemsize

    if max_fused_slab_bytes is None:
        # Fused path = 2 HBM passes vs 3 for the tiled path, so take it whenever
        # the double-buffered in+out slabs fit comfortably in VMEM.
        max_fused_slab_bytes = max(0, (cap - 8 * _MIB) // 6 - w_vmem)

    if slab_vmem <= max_fused_slab_bytes:
        # ---- fused single pass: x read from HBM once, written once ----
        vmem_limit = int(min(cap - 4 * _MIB,
                             max(16 * _MIB, 5 * slab_vmem + w_vmem + 4 * _MIB)))
        out_flat = pl.pallas_call(
            _make_fused_kernel(inv_s),
            out_shape=jax.ShapeDtypeStruct((b, c, s), x.dtype),
            grid_spec=pltpu.PrefetchScalarGridSpec(
                num_scalar_prefetch=0,
                grid=(b,),
                in_specs=[
                    pl.BlockSpec((1, c, s), lambda i: (i, 0, 0)),
                    pl.BlockSpec((cr, c), lambda i: (0, 0)),
                    pl.BlockSpec((c, cr), lambda i: (0, 0)),
                ],
                out_specs=pl.BlockSpec((1, c, s), lambda i: (i, 0, 0)),
            ),
            compiler_params=pltpu.CompilerParams(
                dimension_semantics=("parallel",),
                vmem_limit_bytes=vmem_limit),
        )(x_flat, w1, w2)
    else:
        # ---- two-pass tiled structure: (pool + excite) -> scale ----
        # Spatial tile: multiple of 128 lanes, block capped at ~4 MiB so the
        # ~0.35 us per-grid-step overhead is well amortized on fast-HBM chips.
        tile_cap = 4 * _MIB
        max_ts = max(128, (tile_cap // max(1, c_pad * itemsize)) // 128 * 128)
        ts = min(spatial_tile, max_ts)
        if ts >= s:
            ts = s                      # single full-extent tile (no divisibility issue)
        n_s = pl.cdiv(s, ts)
        needs_mask = (s % ts) != 0      # last tile has undefined OOB input lanes
        block_vmem = c_pad * _round_up(ts, 128) * itemsize
        vmem_limit = int(min(cap - 4 * _MIB,
                             max(16 * _MIB, 6 * block_vmem + w_vmem + 8 * _MIB)))

        # Pass 1: per-(batch, channel) spatial mean + excite, accumulator output.
        # TODO(synk): on v7x at B=1, split the S axis across the two TensorCores
        # (grid=(b, 2, n_s//2) with the middle axis "parallel", partial sums added
        # in the excite step) if a trace shows one core's DMA limiting this pass.
        y = pl.pallas_call(
            _make_pool_excite_kernel(inv_s, ts, s if needs_mask else None),
            out_shape=jax.ShapeDtypeStruct((b, c, 1), jnp.float32),
            grid_spec=pltpu.PrefetchScalarGridSpec(
                num_scalar_prefetch=0,
                grid=(b, n_s),
                in_specs=[
                    pl.BlockSpec((1, c, ts), lambda bi, si: (bi, 0, si)),
                    pl.BlockSpec((cr, c), lambda bi, si: (0, 0)),
                    pl.BlockSpec((c, cr), lambda bi, si: (0, 0)),
                ],
                out_specs=pl.BlockSpec((1, c, 1), lambda bi, si: (bi, 0, 0)),
                scratch_shapes=[pltpu.VMEM((1, c, 1), jnp.float32)],
            ),
            compiler_params=pltpu.CompilerParams(
                dimension_semantics=("parallel", "arbitrary"),
                vmem_limit_bytes=vmem_limit),
        )(x_flat, w1, w2)

        # Pass 2: broadcast-multiply per spatial tile; both grid axes parallel so
        # spatial tiles shard across TensorCores even at B == 1.
        out_flat = pl.pallas_call(
            _scale_kernel,
            out_shape=jax.ShapeDtypeStruct((b, c, s), x.dtype),
            grid_spec=pltpu.PrefetchScalarGridSpec(
                num_scalar_prefetch=0,
                grid=(b, n_s),
                in_specs=[
                    pl.BlockSpec((1, c, ts), lambda bi, si: (bi, 0, si)),
                    pl.BlockSpec((1, c, 1), lambda bi, si: (bi, 0, 0)),
                ],
                out_specs=pl.BlockSpec((1, c, ts), lambda bi, si: (bi, 0, si)),
            ),
            compiler_params=pltpu.CompilerParams(
                dimension_semantics=("parallel", "parallel"),
                vmem_limit_bytes=vmem_limit),
        )(x_flat, y)

    return out_flat.reshape(b, c, d, h, w)


def se_layer_3d_ref(x, w1, w2):
    y = jnp.mean(x, axis=(2, 3, 4))                   # (B, C)
    y = jnp.maximum(y @ w1.T, 0.0)                    # (B, C//r)
    y = y @ w2.T                                      # (B, C)
    y = jnp.clip((y + 3.0) / 6.0, 0.0, 1.0)
    return x * y[:, :, None, None, None]


if __name__ == "__main__":
    key = jax.random.PRNGKey(0)
    kx, k1, k2, kx2, kx3 = jax.random.split(key, 5)

    B, C, reduction = 2, 8, 4
    Cr = C // reduction
    # PyTorch Linear weight shape convention: (out_features, in_features).
    w1 = jax.random.normal(k1, (Cr, C), dtype=jnp.float32) * 0.3
    w2 = jax.random.normal(k2, (C, Cr), dtype=jnp.float32) * 0.3

    # 1) aligned spatial size (S = 512) -> fused single-pass path
    x = jax.random.normal(kx, (B, C, 8, 8, 8), dtype=jnp.float32)
    ref = se_layer_3d_ref(x, w1, w2)
    out = jax.block_until_ready(se_layer_3d(x, w1, w2))
    assert out.shape == x.shape and out.dtype == x.dtype
    assert jnp.allclose(out, ref, atol=1e-5, rtol=1e-5), "fused path mismatch"

    # 2) force the two-pass tiled path (two 256-lane spatial tiles, no mask)
    out = jax.block_until_ready(
        se_layer_3d(x, w1, w2, max_fused_slab_bytes=0, spatial_tile=256))
    assert jnp.allclose(out, ref, atol=1e-5, rtol=1e-5), "two-pass path mismatch"

    # 3) ragged spatial size (S = 105), fused path, no wrapper pad/slice
    x2 = jax.random.normal(kx2, (B, C, 3, 5, 7), dtype=jnp.float32)
    ref2 = se_layer_3d_ref(x2, w1, w2)
    out2 = jax.block_until_ready(se_layer_3d(x2, w1, w2))
    assert out2.shape == x2.shape
    assert jnp.allclose(out2, ref2, atol=1e-5, rtol=1e-5), "fused ragged mismatch"

    # 4) ragged spatial size through the tiled path with a partial last tile
    #    (S = 384, tile = 256 -> last tile masks 128 OOB lanes in the pool)
    x3 = jax.random.normal(kx3, (B, C, 3, 8, 16), dtype=jnp.float32)
    ref3 = se_layer_3d_ref(x3, w1, w2)
    out3 = jax.block_until_ready(
        se_layer_3d(x3, w1, w2, max_fused_slab_bytes=0, spatial_tile=256))
    assert out3.shape == x3.shape
    assert jnp.allclose(out3, ref3, atol=1e-5, rtol=1e-5), "masked tile mismatch"

    print("KERNEL_OK")
</pallas_src>

<mosaic_0001>
module attributes {stable_mosaic.version = 11 : i64} {
  func.func @kernel(%arg0: i32, %arg1: memref<1x8x512xf32, #tpu.memory_space<vmem>>, %arg2: memref<2x8xf32, #tpu.memory_space<vmem>>, %arg3: memref<8x2xf32, #tpu.memory_space<vmem>>, %arg4: memref<1x8x512xf32, #tpu.memory_space<vmem>>) attributes {dimension_semantics = [#tpu.dimension_semantics<parallel>], iteration_bounds = array<i64: 2>, scalar_prefetch = 0 : i64, scratch_operands = 0 : i64, tpu.core_type = #tpu.core_type<tc>, window_params = [{transform_indices = @transform_0, window_bounds = array<i64: 1, 8, 512>}, {pipeline_mode = #tpu.pipeline_mode<synchronous>, transform_indices = @transform_1, window_bounds = array<i64: 2, 8>}, {pipeline_mode = #tpu.pipeline_mode<synchronous>, transform_indices = @transform_2, window_bounds = array<i64: 8, 2>}, {transform_indices = @transform_3, window_bounds = array<i64: 1, 8, 512>}]} {
    %c0 = arith.constant 0 : index
    %c0_0 = arith.constant 0 : index
    %c0_1 = arith.constant 0 : index
    %0 = vector.load %arg1[%c0, %c0_0, %c0_1] : memref<1x8x512xf32, #tpu.memory_space<vmem>>, vector<1x8x512xf32>
    %1 = vector.shape_cast %0 : vector<1x8x512xf32> to vector<8x512xf32>
    %cst = arith.constant dense<0.000000e+00> : vector<8xf32>
    %2 = vector.multi_reduction <add>, %1, %cst [1] : vector<8x512xf32> to vector<8xf32>
    %3 = vector.shape_cast %2 : vector<8xf32> to vector<8x1xf32>
    %cst_2 = arith.constant 0.001953125 : f32
    %4 = vector.broadcast %cst_2 : f32 to vector<8x1xf32>
    %5 = arith.mulf %3, %4 : vector<8x1xf32>
    %c0_3 = arith.constant 0 : index
    %c0_4 = arith.constant 0 : index
    %6 = vector.load %arg2[%c0_3, %c0_4] : memref<2x8xf32, #tpu.memory_space<vmem>>, vector<2x8xf32>
    %cst_5 = arith.constant dense<0.000000e+00> : vector<2x1xf32>
    %7 = tpu.matmul %6, %5, %cst_5 {dimension_numbers = #tpu.dot_dimension_numbers<[1], [0], [0], [1], [0, 0, 1, 1], [], []>} : vector<2x8xf32>, vector<8x1xf32>, vector<2x1xf32> -> vector<2x1xf32>
    %cst_6 = arith.constant 0.000000e+00 : f32
    %8 = vector.broadcast %cst_6 : f32 to vector<2x1xf32>
    %9 = arith.maximumf %7, %8 : vector<2x1xf32>
    %c0_7 = arith.constant 0 : index
    %c0_8 = arith.constant 0 : index
    %10 = vector.load %arg3[%c0_7, %c0_8] : memref<8x2xf32, #tpu.memory_space<vmem>>, vector<8x2xf32>
    %cst_9 = arith.constant dense<0.000000e+00> : vector<8x1xf32>
    %11 = tpu.matmul %10, %9, %cst_9 {dimension_numbers = #tpu.dot_dimension_numbers<[1], [0], [0], [1], [0, 0, 1, 1], [], []>} : vector<8x2xf32>, vector<2x1xf32>, vector<8x1xf32> -> vector<8x1xf32>
    %cst_10 = arith.constant 3.000000e+00 : f32
    %12 = vector.broadcast %cst_10 : f32 to vector<8x1xf32>
    %13 = arith.addf %11, %12 : vector<8x1xf32>
    %cst_11 = arith.constant 0.166666672 : f32
    %14 = vector.broadcast %cst_11 : f32 to vector<8x1xf32>
    %15 = arith.mulf %13, %14 : vector<8x1xf32>
    %cst_12 = arith.constant 0.000000e+00 : f32
    %cst_13 = arith.constant 1.000000e+00 : f32
    %16 = vector.broadcast %cst_12 : f32 to vector<8x1xf32>
    %17 = arith.maximumf %16, %15 : vector<8x1xf32>
    %18 = vector.broadcast %cst_13 : f32 to vector<8x1xf32>
    %19 = arith.minimumf %18, %17 : vector<8x1xf32>
    %c0_14 = arith.constant 0 : index
    %c0_15 = arith.constant 0 : index
    %c0_16 = arith.constant 0 : index
    %20 = vector.load %arg1[%c0_14, %c0_15, %c0_16] : memref<1x8x512xf32, #tpu.memory_space<vmem>>, vector<1x8x512xf32>
    %21 = vector.shape_cast %20 : vector<1x8x512xf32> to vector<8x512xf32>
    %22 = vector.broadcast %19 : vector<8x1xf32> to vector<8x512xf32>
    %23 = arith.mulf %21, %22 : vector<8x512xf32>
    %c0_17 = arith.constant 0 : index
    %c0_18 = arith.constant 0 : index
    %c0_19 = arith.constant 0 : index
    %24 = vector.load %arg4[%c0_17, %c0_18, %c0_19] : memref<1x8x512xf32, #tpu.memory_space<vmem>>, vector<1x8x512xf32>
    %25 = vector.shape_cast %24 : vector<1x8x512xf32> to vector<8x512xf32>
    %26 = vector.shape_cast %23 : vector<8x512xf32> to vector<1x8x512xf32>
    tpu.vector_store %arg4[%c0_17, %c0_18, %c0_19], %26 {strides = array<i32>} : memref<1x8x512xf32, #tpu.memory_space<vmem>>, vector<1x8x512xf32>,
    return
  }
  func.func @transform_0(%arg0: i32) -> (i32, i32, i32) {
    %c0_i32 = arith.constant 0 : i32
    %c0_i32_0 = arith.constant 0 : i32
    %c0_i32_1 = arith.constant 0 : i32
    return %arg0, %c0_i32, %c0_i32_0 : i32, i32, i32
  }
  func.func @transform_1(%arg0: i32) -> (i32, i32) {
    %c0_i32 = arith.constant 0 : i32
    %c0_i32_0 = arith.constant 0 : i32
    %c0_i32_1 = arith.constant 0 : i32
    return %c0_i32, %c0_i32_0 : i32, i32
  }
  func.func @transform_2(%arg0: i32) -> (i32, i32) {
    %c0_i32 = arith.constant 0 : i32
    %c0_i32_0 = arith.constant 0 : i32
    %c0_i32_1 = arith.constant 0 : i32
    return %c0_i32, %c0_i32_0 : i32, i32
  }
  func.func @transform_3(%arg0: i32) -> (i32, i32, i32) {
    %c0_i32 = arith.constant 0 : i32
    %c0_i32_0 = arith.constant 0 : i32
    %c0_i32_1 = arith.constant 0 : i32
    return %arg0, %c0_i32, %c0_i32_0 : i32, i32, i32
  }
}

</mosaic_0001>

<bundles_post_ra>
// kernel: tpu_custom_call.1
= control target key start
LH: loop header
LB: loop body
LE: loop exit
PB: predicated region body
PF: predicated region fallthrough
CT: control target
= control target key end

     0   :  { %8 = vsyncpa [#allocation3], 0  ;;  %s830_s0 = inlined_call_operand.hbm [shape: f32[2,8,512], index: 0, kind: input, shape index: {}]   ;;  %s831_s1 = inlined_call_operand.vmem [shape: f32[2,8], index: 1, kind: input, shape index: {}]   ;;  %s832_s2 = inlined_call_operand.vmem [shape: f32[8,2], index: 2, kind: input, shape index: {}]   ;;  %s833_s3 = inlined_call_operand.hbm [shape: f32[2,8,512], index: 3, kind: output, shape index: {}]  }
   0x1   :  { %10 = vsyncpa [#allocation3 + $0x1], 0 }
   0x2   :  { %11 = vsyncpa [#allocation4], 0 }
   0x3   :  { %13 = vsyncpa [#allocation4 + $0x1], 0  ;;  %s659_s12 = smov 0   ;;  %s661_s13 = smov 0  }
   0x4   :  { %s663_s14 = smov 0   ;;  %s665_s15 = smov 0  }
   0x5 LB: > { %s680_s16 = sadd.s32 4294967295, %s632_s15   ;;  %s453_s17 = sadd.s32 4294967294, %s632_s15   ;;  %s632_s15 = sphi %s665_s15, %s848_s15   ;;  %s628_s14 = sphi %s663_s14, %s847_s14   ;;  %s624_s13 = sphi %s661_s13, %s846_s13   ;;  %s620_s12 = sphi %s659_s12, %s845_s12  }
   0x6   : > { %s684_s18 = sadd.s32 1, %s632_s15   ;;  %s26_s19 = sadd.s32 1, %s628_s14 }
   0x7   : > { %s23_s20 = ssub.s32 %s632_s15, %s684_s18  ;;  %p33_p0 = scmp.ne.s32.totalorder %s628_s14, %s624_s13 }
   0x8   : > { %p24_p1 = scmp.eq.s32.totalorder %s23_s20, 0  ;;  %p34_p2 = scmp.eq.s32.totalorder %s632_s15, 0 }
   0x9   : > { %p39_p3 = scmp.ne.s32.totalorder %s624_s13, %s620_s12  ;;  %p40_p4 = scmp.eq.s32.totalorder %s680_s16, 0 }
   0xa   : > { %s696_s21 = scalar_select %p24_p1, %s628_s14, %s26_s19  }
   0xb   : > { %p698_p5 = por %p34_p2, %p33_p0  ;;  %p702_p6 = por %p40_p4, %p39_p3 }
   0xc   : > { %p105_p7 = scmp.eq.s32.totalorder %s680_s16, 1  ;;  %p111_p8 = scmp.eq.s32.totalorder %s453_s17, 1 }
   0xd   : > { %p498_p10 = scmp.lt.s32.totalorder %s632_s15, 2  ;;  %s137_s26 = sand.u32 1, %s628_s14  }
   0xe   : > { %p709_p11 = por %p105_p7, %p33_p0  ;;  %p713_p12 = por %p111_p8, %p39_p3 }
   0xf   : > { %s470_s27 = sshll.u32 %s632_s15, 9  ;;  %s456_s28 = sshll.u32 %s137_s26, 5 }
  0x10   : > { %s837_s24 = scalar_select %p709_p11, 1, 0 }
  0x11   : > { %s838_s25 = scalar_select %p713_p12, 1, 0 }
  0x12   : > { %s722_s4 = scalar_lea.hbm %s830_s0, %s470_s27  ;;  %s141_s5 = scalar_lea.vmem [#allocation2], %s456_s28 }
  0x13   : > { %s149_s6 = sshll.u32 %s141_s5, 4  ;;  %p726_p13 = pnand %p498_p10, %p698_p5  ;;  %s730_s6 = int_to_ptr.vmem [resolvable:$true] %s149_s6 }
  0x14   : > { %s138_s8 = scalar_lea.sflag [#allocation3], %s137_s26  ;;  %s536_s9 = scalar_lea.hbm %s722_s4, 512 }
  0x15   : > { %p537_p2 = scmp.ne.s32.totalorder %s722_s4, %s536_s9  ;;  %p538_p3 = pneg %p726_p13 }
  0x16   : > { %s541_s17 = scalar_lea.hbm %s830_s0, 1024  ;;  %p542_p5 = scmp.lt.u32.totalorder %s722_s4, %s830_s0 }
  0x17   : > { %p539_p4 = pnand %p538_p3, %p537_p2  ;;  %p543_p8 = scmp.lt.u32.totalorder %s541_s17, %s536_s9 }
  0x18   : > { %p545_p9 = scmp.lt.u32.totalorder %s536_s9, %s722_s4 }
  0x19   : > { %p540_p7 = pneg %p539_p4  ;;  %p544_p10 = por %p543_p8, %p542_p5 }
  0x1b   : > { %p546_p0 = por %p545_p9, %p544_p10 }
  0x1d   : > { %p547_p1 = pnand %p546_p0, %p540_p7 }
  0x1f   : > { %550 = shalt.err (!%p547_p1)
}
  0x20   : > { %s551_s22 = scalar_lea.vmem %s730_s6, 512  ;;  %s634_s26 = smov [#allocation2]  }
  0x21   : > { %p552_p2 = scmp.ne.s32.totalorder %s730_s6, %s551_s22  ;;  %s556_s27 = sshll.u32 %s634_s26, 4  ;;  %s557_s27 = int_to_ptr.vmem [resolvable:$false] %s556_s27 }
  0x22   : > { %s558_s28 = scalar_lea.vmem %s557_s27, 1024  ;;  %p559_p11 = scmp.lt.s32.totalorder %s730_s6, %s557_s27 }
  0x23   : > { %p554_p4 = pnand %p552_p2, %p538_p3  ;;  %p560_p5 = scmp.lt.s32.totalorder %s558_s28, %s551_s22 }
  0x25   : > { %p555_p12 = pneg %p554_p4  ;;  %p561_p8 = por %p560_p5, %p559_p11 }
  0x27   : > { %p562_p9 = pnand %p561_p8, %p555_p12 }
  0x29   : > { %565 = shalt.err (!%p562_p9)
}
  0x2a   : > { %493 = dma.hbm_to_vmem [thread:$0]  (!%p726_p13), %s722_s4, 512, %s730_s6, %s138_s8  }
  0x2b   : > { %p840_p0 = scmp.lt.s32.totalorder %s632_s15, 3  ;;  %p841_p1 = scmp.ge.s32.totalorder %s632_s15, 1 }
  0x2d   : > { %p155_p3 = pnand %p841_p1, %p840_p0 }
  0x2e   : > { %s764_s29 = sand.u32 (!%p155_p3), 1, %s624_s13  }
  0x2f   : > { %158 = sbr.rel (%p155_p3) target bundleno = 787 (0x313), region = 32  ;;  %s460_s30 = sshll.u32 (!%p155_p3), %s764_s29, 5 }
  0x30   : > { %s161_s5 = scalar_lea.sflag (!%p155_p3), [#allocation3], %s764_s29  ;;  %s164_s7 = scalar_lea.vmem (!%p155_p3), [#allocation2], %s460_s30 }
  0x36   : > { %611 = dma.done.wait (%p702_p6), %s161_s5, 512  }
  0x37   : > { %613 = vsyncadd (%p702_p6), %s161_s5, 4294966784  ;;  %v187_v0 = vld [vmem:[%s164_s7] sm:$0xff]  ;;  %v188_v1 = vld [vmem:[%s164_s7 + $0x8] sm:$0xff]  ;;  %v635_v7 = vmov 0.0   ;;  %vm636_vm0 = vmmov 0   ;;  %vm198_vm1 = vcmask 64512  }
  0x38   : > { %v189_v2 = vld [vmem:[%s164_s7 + $0x10] sm:$0xff]  ;;  %v191_v3 = vadd.f32 %v188_v1, %v187_v0  ;;  %v190_v4 = vld [vmem:[%s164_s7 + $0x18] sm:$0xff]  ;;  %476 = vmatprep.subr.mxu0 %v635_v7  ;;  %481 = vmatprep.subr.mxu1 %v635_v7  ;;  %v197_v10 = vld [vmem:[%s831_s1] sm:$0x3]  ;;  %vm278_vm2 = vcmask 1041408   ;;  %vm274_vm3 = vcmask 15360  }
  0x39   : > { %478 = vmatprep.mubr.msk.f32.mxu0 %vm636_vm0, %v635_v7  ;;  %483 = vmatprep.mubr.msk.f32.mxu1 %vm636_vm0, %v635_v7  ;;  %v273_v14 = vld [vmem:[%s832_s2] sm:$0xff]  ;;  %v637_v15 = vmov 0   ;;  %s471_s9 = sshll.u32 %s680_s16, 9  ;;  %s186_s10 = scalar_lea.vmem [#allocation5], %s460_s30 }
  0x3a   : > { %v192_v5 = vadd.f32 %v191_v3, %v189_v2  ;;  %535 = vset.pattern.permute.xlu0 %v637_v15  ;;  %s383_s11 = sshll.u32 %s186_s10, 4  ;;  %s786_s20 = scalar_lea.hbm %s833_s3, %s471_s9  ;;  %s788_s11 = int_to_ptr.vmem [resolvable:$true] %s383_s11 }
  0x3b   : > { %s369_s16 = scalar_lea.sflag [#allocation4], %s764_s29  ;;  %s566_s22 = scalar_lea.vmem %s788_s11, 512 }
  0x3c   : > { %v193_v6 = vadd.f32 %v192_v5, %v190_v4  ;;  %p567_p6 = scmp.ne.s32.totalorder %s788_s11, %s566_s22  ;;  %p842_p11 = scmp.ne.s32.totalorder %s837_s24, 0 }
  0x3d   : > { %s638_s26 = smov [#allocation5]  }
  0x3e   : > { %194 = vadd.xlane.f32.xlu0 %v193_v6  ;;  %p568_p12 = pnand %p567_p6, %p842_p11  ;;  %s570_s27 = sshll.u32 %s638_s26, 4  ;;  %s571_s27 = int_to_ptr.vmem [resolvable:$false] %s570_s27 }
  0x3f   : > { %s572_s28 = scalar_lea.vmem %s571_s27, 1024  ;;  %p573_p7 = scmp.lt.s32.totalorder %s788_s11, %s571_s27 }
  0x40   : > { %p569_p13 = pneg %p568_p12  ;;  %p574_p10 = scmp.lt.s32.totalorder %s572_s28, %s566_s22 }
  0x42   : > { %p575_p2 = por %p574_p10, %p573_p7 }
  0x44   : > { %p576_p4 = pnand %p575_p2, %p569_p13 }
  0xcb   : > { %v195_v8 = vpop.xlane.xlu0 %194 }
  0xcc   : > { %v196_v9 = vmul.f32 0.001953125, %v195_v8 }
  0xce   : > { %477 = vmatpush3.msra.mxu0 %v196_v9 }
  0xcf   : > { %479 = vmatmul.mubr.msk.f32.vlgmr.msra.gmra.mrb[0].mxu0 %vm198_vm1, %v197_v10 }
 0x1a2   : > { %v268_v11 = vpop.f32.mrb[0].mxu0 }
 0x1a3   : > { %v272_v12 = vmax.f32 %v268_v11, 0.0  ;;  %v480_v13 = vpop.f32.mrb[1].mxu0 }
 0x1a5   : > { %482 = vmatpush3.msk.msra.mxu1 %vm278_vm2, %v272_v12 }
 0x1a6   : > { %484 = vmatmul.mubr.msk.f32.vlgmr.msra.gmra.mrb[0].mxu1 %vm274_vm3, %v273_v14 }
 0x279   : > { %v348_v16 = vpop.f32.mrb[0].mxu1 }
 0x27a   : > { %v349_v17 = vadd.f32 3.0, %v348_v16  ;;  %v485_v18 = vpop.f32.mrb[1].mxu1 }
 0x27c   : > { %v352_v19 = vmul.f32 0.16666667, %v349_v17 }
 0x27e   : > { %v353_v20 = vmax.f32 %v352_v19, 0.0 }
 0x280   : > { %v354_v21 = vmin.f32 %v353_v20, 1.0 }
 0x282   : > { %357 = vperm.xlu0 %535, %v354_v21  }
 0x301   : > { %v358_v22 = vpop.permute.xlu0 %357 }
 0x302   : > { %v360_v23 = vmul.f32 %v358_v22, %v187_v0  ;;  %v361_v24 = vmul.f32 %v358_v22, %v188_v1  ;;  %v362_v25 = vmul.f32 %v358_v22, %v189_v2  ;;  %v363_v26 = vmul.f32 %v358_v22, %v190_v4 }
 0x304   : > { %364 = vst [vmem:[%s186_s10] sm:$0xff] %v360_v23  ;;  %365 = vst [vmem:[%s186_s10 + $0x8] sm:$0xff] %v361_v24 }
 0x305   : > { %366 = vst [vmem:[%s186_s10 + $0x10] sm:$0xff] %v362_v25  ;;  %367 = vst [vmem:[%s186_s10 + $0x18] sm:$0xff] %v363_v26 }
 0x306   : > { %579 = shalt.err (!%p576_p4)
}
 0x307   : > { %s580_s29 = scalar_lea.hbm %s786_s20, 512  ;;  %s584_s7 = scalar_lea.hbm %s833_s3, 1024 }
 0x308   : > { %p581_p5 = scmp.ne.s32.totalorder %s786_s20, %s580_s29  ;;  %p585_p0 = scmp.lt.u32.totalorder %s786_s20, %s833_s3 }
 0x309   : > { %p586_p1 = scmp.lt.u32.totalorder %s584_s7, %s580_s29  ;;  %p588_p6 = scmp.lt.u32.totalorder %s580_s29, %s786_s20 }
 0x30a   : > { %p582_p8 = pnand %p581_p5, %p842_p11 }
 0x30b   : > { %p587_p3 = por %p586_p1, %p585_p0 }
 0x30c   : > { %p583_p9 = pneg %p582_p8 }
 0x30d   : > { %p589_p12 = por %p588_p6, %p587_p3 }
 0x30f   : > { %p590_p13 = pnand %p589_p12, %p583_p9 }
 0x311   : > { %593 = shalt.err (!%p590_p13)
}
 0x312   : > { %488 = dma.vmem_to_hbm [thread:$0]  (%p842_p11), %s788_s11, 512, %s786_s20, %s369_s16  }
 0x313 PF: > { %s395_s23 = sand.u32 1, %s620_s12   ;;  %p843_p7 = scmp.ne.s32.totalorder %s838_s25, 0 }
 0x314   : > { %p844_p10 = scmp.ge.s32.totalorder %s632_s15, 2  ;;  %s396_s8 = scalar_lea.sflag [#allocation4], %s395_s23 }
 0x316   : > { %p495_p2 = pnand %p844_p10, %p843_p7 }
 0x318   : > { %615 = dma.done.wait (!%p495_p2), %s396_s8, 512  }
 0x319   : > { %617 = vsyncadd (!%p495_p2), %s396_s8, 4294966784  ;;  %p16_p4 = scmp.ge.s32.totalorder %s684_s18, 4   ;;  %s845_s12 = smov %s624_s13 }
 0x31a   : > { %s846_s13 = smov %s628_s14  ;;  %s847_s14 = smov %s696_s21 }
 0x31b   : > { %s848_s15 = smov %s684_s18  ;;  %18 = sbr.rel (!%p16_p4) target bundleno = 5 (0x5), region = 77 }
 0x322   :  { %401 = vsyncpa [#allocation3], 1 }
 0x323   :  { %403 = vsyncpa [#allocation3 + $0x1], 1 }
 0x324   :  { %404 = vsyncpa [#allocation4], 1 }
 0x325   :  { %406 = vsyncpa [#allocation4 + $0x1], 1 }

</bundles_post_ra>
